<compile_context>
chip_gen: v6e
topology: v6e:2x2x1
jax: 0.10.0
libtpu: 0.0.40
codegen_flags: <defaults>
</compile_context>

<pallas_src>
import jax
import jax.numpy as jnp
from jax.experimental import pallas as pl
from jax.experimental.pallas import tpu as pltpu

_LANE = 128          # vreg lane width
_SUBLANE_32 = 8      # vreg sublane count for 32-bit dtypes
_COLS_CAP = 4096     # max lane-dense column width for the tiled fallback


def _sublane_for_dtype(dtype) -> int:
    """Dtype-aware sublane alignment: 8 for f32, 16 for bf16, 32 for int8/fp8."""
    itemsize = jnp.dtype(dtype).itemsize
    return _SUBLANE_32 * max(1, 4 // itemsize)


# -----------------------------------------------------------------------------
# Path 1 (default): zero-copy aliased identity.
# -----------------------------------------------------------------------------
def _aliased_identity_kernel(x_hbm_ref, o_hbm_ref, flag_ref):
    # o_hbm_ref aliases x_hbm_ref's HBM buffer (input_output_aliases={0: 0}),
    # so the identity forward needs no data movement.  Tiny SMEM marker write
    # keeps the lowered kernel body non-empty (no VMEM->HBM writeback).
    del x_hbm_ref, o_hbm_ref
    flag_ref[0, 0] = jnp.int32(1)


def _aliased_identity(x: jax.Array) -> jax.Array:
    # NOTE: for this to be genuinely zero-copy the caller must donate the
    # input buffer, e.g. jax.jit(fn, donate_argnums=0); otherwise XLA inserts
    # one defensive full-tensor copy (correct, just not free).
    out, _ = pl.pallas_call(
        _aliased_identity_kernel,
        out_shape=(
            jax.ShapeDtypeStruct(x.shape, x.dtype),        # aliased to input 0
            jax.ShapeDtypeStruct((1, 1), jnp.int32),        # SMEM marker (discarded)
        ),
        in_specs=[pl.BlockSpec(memory_space=pl.ANY)],
        out_specs=(
            pl.BlockSpec(memory_space=pl.ANY),
            pl.BlockSpec(memory_space=pltpu.MemorySpace.SMEM),
        ),
        input_output_aliases={0: 0},
        compiler_params=pltpu.CompilerParams(has_side_effects=True),
    )(x)
    return out


# -----------------------------------------------------------------------------
# Path 2 (materialize=True, primary): direct HBM->HBM DMA copy.
# -----------------------------------------------------------------------------
def _pick_n_chunks(leading: int) -> int:
    for n in (4, 2):
        if leading >= n and leading % n == 0:
            return n
    return 1


def _make_dma_copy_kernel(leading: int, n_chunks: int):
    chunk = max(1, leading // max(1, n_chunks))

    def kernel(x_hbm, o_hbm, sems):
        if n_chunks == 1:
            cp = pltpu.make_async_copy(x_hbm, o_hbm, sems.at[0])
            cp.start()
            cp.wait()
            return
        # Issue all chunk DMAs (separate semaphores -> parallel DMA engines),
        # then wait on all of them.
        for c in range(n_chunks):
            pltpu.make_async_copy(
                x_hbm.at[pl.ds(c * chunk, chunk)],
                o_hbm.at[pl.ds(c * chunk, chunk)],
                sems.at[c],
            ).start()
        for c in range(n_chunks):
            pltpu.make_async_copy(
                x_hbm.at[pl.ds(c * chunk, chunk)],
                o_hbm.at[pl.ds(c * chunk, chunk)],
                sems.at[c],
            ).wait()

    return kernel


def _dma_identity_copy(x: jax.Array) -> jax.Array:
    leading = x.shape[0] if x.ndim >= 1 else 1
    n_chunks = _pick_n_chunks(leading) if x.ndim >= 1 else 1
    kernel = _make_dma_copy_kernel(leading, n_chunks)
    nbytes = x.size * jnp.dtype(x.dtype).itemsize
    return pl.pallas_call(
        kernel,
        out_shape=jax.ShapeDtypeStruct(x.shape, x.dtype),
        in_specs=[pl.BlockSpec(memory_space=pl.ANY)],
        out_specs=pl.BlockSpec(memory_space=pl.ANY),
        scratch_shapes=[pltpu.SemaphoreType.DMA((n_chunks,))],
        cost_estimate=pl.CostEstimate(
            flops=0, transcendentals=0, bytes_accessed=2 * nbytes),
    )(x)


# -----------------------------------------------------------------------------
# Path 3 (materialize=True, use_dma=False): tiled, pipelined VMEM copy fallback.
# -----------------------------------------------------------------------------
def _copy_kernel(x_ref, o_ref):
    o_ref[...] = x_ref[...]


def _chip_copy_config():
    """(block_bytes_target, vmem_limit_bytes) gated per TPU generation."""
    vmem_cap = None
    try:
        info = pltpu.get_tpu_info()
        vmem_cap = getattr(info, "vmem_capacity_bytes", None)
    except Exception:
        vmem_cap = None
    if vmem_cap is None or vmem_cap < 96 * 1024 * 1024:
        # v7x-class (64 MiB VMEM/TC) or unknown: stay conservative.
        return 4 * 1024 * 1024, 32 * 1024 * 1024
    # v5e / v6e (128 MiB VMEM): bigger blocks amortize per-step overhead.
    return 8 * 1024 * 1024, 64 * 1024 * 1024


def _pick_block_rows(rows: int, cols: int, itemsize: int, sublane: int,
                     block_target: int) -> int:
    """Largest sublane-aligned row count dividing `rows`, ~<= block_target bytes,
    keeping >= 2 grid steps when possible (v7x megacore sharding)."""
    if rows % sublane != 0 or cols % _LANE != 0:
        return rows  # full-extent block (always layout-legal)
    br = max(sublane, min(rows, block_target // max(1, cols * itemsize)))
    br -= br % sublane
    br = max(br, sublane)
    while br > sublane and rows % br != 0:
        br -= sublane
    if rows // br < 2 and rows >= 2 * sublane:
        br = rows // 2
        br -= br % sublane
        br = max(br, sublane)
        while br > sublane and rows % br != 0:
            br -= sublane
    return br


def _tiled_identity_copy(x: jax.Array) -> jax.Array:
    dtype = x.dtype
    itemsize = jnp.dtype(dtype).itemsize
    sublane = _sublane_for_dtype(dtype)
    total = x.size
    lane_block = sublane * _LANE

    # Pad the flattened tensor to a multiple of (sublane * 128) so every block
    # is lane/sublane dense (unmasked vst), then slice back afterwards.
    pad = (-total) % lane_block
    flat = jnp.reshape(x, (-1,))
    if pad:
        flat = jnp.pad(flat, (0, pad))
    padded = total + pad

    # Widen cols (multiple of 128 dividing the padded count), keeping the row
    # axis a multiple of `sublane` and long enough for >= 2 grid steps.
    cols = _LANE
    while (cols * 2 <= _COLS_CAP
           and padded % (cols * 2) == 0
           and (padded // (cols * 2)) % sublane == 0
           and (padded // (cols * 2)) >= 2 * sublane):
        cols *= 2
    rows = padded // cols
    x2d = flat.reshape(rows, cols)

    block_target, vmem_limit = _chip_copy_config()
    br = _pick_block_rows(rows, cols, itemsize, sublane, block_target)
    grid = (rows // br,)  # br divides rows by construction

    out2d = pl.pallas_call(
        _copy_kernel,
        out_shape=jax.ShapeDtypeStruct((rows, cols), dtype),
        grid=grid,
        in_specs=[pl.BlockSpec((br, cols), lambda i: (i, 0))],
        out_specs=pl.BlockSpec((br, cols), lambda i: (i, 0)),
        compiler_params=pltpu.CompilerParams(
            dimension_semantics=("parallel",),   # shard row tiles across TCs
            vmem_limit_bytes=vmem_limit,
        ),
        cost_estimate=pl.CostEstimate(
            flops=0, transcendentals=0, bytes_accessed=2 * padded * itemsize),
    )(x2d)

    out = out2d.reshape(padded)
    if pad:
        out = out[:total]
    return out.reshape(x.shape)


# -----------------------------------------------------------------------------
# Public wrapper: the BaseVAE "forward" (identity pass-through).
# -----------------------------------------------------------------------------
def base_vae_forward(x_nchw: jax.Array, *, materialize: bool = False,
                     use_dma: bool = True) -> jax.Array:
    """Identity forward for BaseVAE implemented with Pallas TPU kernels.

    materialize=False (default): zero-copy aliased pass-through (~0 HBM traffic,
        assuming the caller donates the input buffer).
    materialize=True, use_dma=True: direct HBM->HBM DMA copy (primary).
    materialize=True, use_dma=False: BlockSpec-pipelined VMEM copy (fallback).
    """
    if not materialize:
        return _aliased_identity(x_nchw)
    if use_dma:
        return _dma_identity_copy(x_nchw)
    return _tiled_identity_copy(x_nchw)


if __name__ == "__main__":
    key = jax.random.PRNGKey(0)
    # Small NCHW input consistent with a VAE image input: batch=2, C=4, 16x16.
    x = jax.random.normal(key, (2, 4, 16, 16), dtype=jnp.float32)

    # Default zero-copy aliased path.
    y = jax.block_until_ready(base_vae_forward(x))
    assert y.shape == x.shape and y.dtype == x.dtype
    assert bool(jnp.array_equal(y, x)), "aliased pass-through mismatch"

    # Primary materializing path: direct HBM->HBM DMA (2 chunks here).
    y2 = jax.block_until_ready(base_vae_forward(x, materialize=True))
    assert y2.shape == x.shape and y2.dtype == x.dtype
    assert bool(jnp.array_equal(y2, x)), "DMA-copy pass-through mismatch"

    # Fallback materializing path: tiled VMEM copy (f32, 128-divisible size).
    y3 = jax.block_until_ready(base_vae_forward(x, materialize=True, use_dma=False))
    assert y3.shape == x.shape and y3.dtype == x.dtype
    assert bool(jnp.array_equal(y3, x)), "tiled-copy pass-through mismatch"

    # Fallback path with a bf16, non-128-divisible tensor (exercises dtype-aware
    # sublane alignment + pad/slice handling).
    xb = jax.random.normal(jax.random.PRNGKey(0), (3, 5, 7), dtype=jnp.bfloat16)
    y4 = jax.block_until_ready(base_vae_forward(xb, materialize=True, use_dma=False))
    assert y4.shape == xb.shape and y4.dtype == xb.dtype
    assert bool(jnp.array_equal(y4, xb)), "padded tiled-copy mismatch"

    # And the same ragged tensor through the DMA path (1-chunk case).
    y5 = jax.block_until_ready(base_vae_forward(xb, materialize=True))
    assert bool(jnp.array_equal(y5, xb)), "1-chunk DMA-copy mismatch"

    print("KERNEL_OK")
</pallas_src>

<mosaic_0001>
module attributes {stable_mosaic.version = 11 : i64} {
  func.func @_aliased_identity_kernel(%arg0: memref<2x4x16x16xf32, #tpu.memory_space<any>>, %arg1: memref<2x4x16x16xf32, #tpu.memory_space<any>>, %arg2: memref<1x1xi32, #tpu.memory_space<smem>>) attributes {dimension_semantics = [], scalar_prefetch = 0 : i64, scratch_operands = 0 : i64, tpu.core_type = #tpu.core_type<tc>} {
    %c1_i32 = arith.constant 1 : i32
    %c0 = arith.constant 0 : index
    %c0_0 = arith.constant 0 : index
    %0 = memref.load %arg2[%c0, %c0_0] : memref<1x1xi32, #tpu.memory_space<smem>>
    memref.store %c1_i32, %arg2[%c0, %c0_0] : memref<1x1xi32, #tpu.memory_space<smem>>
    return
  }
}

</mosaic_0001>

<bundles_post_ra>
// kernel: tpu_custom_call.1
= control target key start
LH: loop header
LB: loop body
LE: loop exit
PB: predicated region body
PF: predicated region fallthrough
CT: control target
= control target key end

     0   :  { %8 = vsyncpa [#allocation3], 0  ;;  %s36_s9 = smov 1   ;;  %s37_s10 = smov [#allocation2]   ;;  %s56_s0 = inlined_call_operand.hbm [shape: f32[2,4,16,16], index: 0, kind: input, shape index: {}, may-alias: {0,1}]   ;;  %s57_s1 = inlined_call_operand.hbm [shape: f32[2,4,16,16], index: 1, kind: output, shape index: {0}, may-alias: {0,1}]   ;;  %s58_s2 = inlined_call_operand.hbm [shape: s32[1,1], index: 2, kind: output, shape index: {1}]  }
   0x1   :  { %10 = sst [smem:[#allocation2]] %s36_s9 }
   0x2   :  { %18 = dma.smem_to_hbm %s37_s10, 16, %s58_s2, [#allocation3]  }
   0x3   :  { %34 = dma.done.wait [#allocation3], 16  }
   0x4   :  { %35 = vsyncadd [#allocation3], 4294967280 }
   0x5   :  { %22 = sfence }
   0x6   :  { %23 = vsyncpa [#allocation3], 1 }

</bundles_post_ra>
